<compile_context>
chip_gen: v6e
topology: v6e:2x2x1
jax: 0.10.0
libtpu: 0.0.40
codegen_flags: <defaults>
</compile_context>

<pallas_src>
import math

import jax
import jax.numpy as jnp
from jax import lax
from jax.experimental import pallas as pl
from jax.experimental.pallas import tpu as pltpu


def _round_up(x, m):
    return (x + m - 1) // m * m


def _lane_pad(n):
    # f32 VMEM tiles pad the lane (last) dim to a multiple of 128.
    return max(128, _round_up(n, 128))


def _auto_batch_tile(B, S, A, vmem_budget_bytes):
    """Pick the batch tile (rows per grid step) from the VMEM budget."""
    # Per batch row, double-buffered: two lane-padded f32 input rows plus the
    # 8-sublane-padded f32 output column.
    bytes_per_row = 2 * 4 * (_lane_pad(S) + _lane_pad(A)) + 2 * 4 * 8
    tb = max(128, (vmem_budget_bytes // bytes_per_row) // 128 * 128)
    # v7x has 2 TensorCores: keep >= 2 grid steps when the batch is big enough
    # to split (no-op for single-core v5e/v6e).
    tb = min(tb, _round_up(-(-B // 2), 128))
    if tb >= B:
        # Single grid step: block == full array dims, so no (8,128) constraint
        # and no padding of any kind is needed.
        tb = B
    return tb


def _dual_critic_kernel(state_ref, action_ref, ws_ref, wa_ref, b_ref, q_ref):
    # q_T[h, b] = sum_d W[h, d] * x[b, d]  (split at the concat boundary):
    #   [state|action] @ [W_s|W_a].T  ==  state @ W_s.T + action @ W_a.T
    # Contracting the feature (last) axis of BOTH operands is the q @ k.T
    # pattern: no activation transpose, and the (2, tb) result is lane-dense.
    dn = (((1,), (1,)), ((), ()))
    acc = lax.dot_general(ws_ref[...], state_ref[...], dn,
                          preferred_element_type=jnp.float32)
    acc = acc + lax.dot_general(wa_ref[...], action_ref[...], dn,
                                preferred_element_type=jnp.float32)
    # (2, 1) bias broadcasts along the lane (batch) axis.
    q_ref[...] = (acc + b_ref[...]).astype(q_ref.dtype)


def fuse_dual_critic_params(w1, b1, w2, b2, state_dim):
    """Fuse the two heads once (call at init, not per forward).

    w1, w2: (1, state_dim + action_dim) in nn.Linear (out, in) layout.
    b1, b2: (1,)
    Returns (w_s (2, S), w_a (2, A), b (2, 1)).
    """
    w_s = jnp.concatenate([w1[:, :state_dim], w2[:, :state_dim]], axis=0)
    w_a = jnp.concatenate([w1[:, state_dim:], w2[:, state_dim:]], axis=0)
    b = jnp.concatenate([b1.reshape(-1), b2.reshape(-1)]).reshape(2, 1)
    return (w_s.astype(jnp.float32), w_a.astype(jnp.float32),
            b.astype(jnp.float32))


def dual_critic_forward(state, action, w_s, w_a, b, *, vmem_budget_bytes=8 << 20):
    """DualCritic forward in a single Pallas kernel.

    state:  (B, state_dim)   float32
    action: (B, action_dim)  float32
    w_s, w_a, b: fused params from fuse_dual_critic_params.
    returns (q1, q2), each (B, 1) float32.
    """
    B, S = state.shape
    A = action.shape[1]
    assert w_s.shape == (2, S) and w_a.shape == (2, A) and b.shape == (2, 1)

    tb = _auto_batch_tile(B, S, A, vmem_budget_bytes)
    grid = (pl.cdiv(B, tb),)

    # Explicit VMEM limit sized from the double-buffered, lane/sublane-padded
    # footprint (v5e's scoped default is only 16 MiB).
    est = 2 * 4 * _round_up(tb, 8) * (_lane_pad(S) + _lane_pad(A))  # inputs x2 bufs
    est += 2 * 4 * 8 * _lane_pad(tb)                                # output  x2 bufs
    est += 3 * 2 * 4 * 8 * 128                                      # resident weights/bias
    vmem_limit = int(min(32 << 20, max(2 * est, 16 << 20)))

    q = pl.pallas_call(
        _dual_critic_kernel,
        out_shape=jax.ShapeDtypeStruct((2, B), jnp.float32),
        grid_spec=pltpu.PrefetchScalarGridSpec(
            num_scalar_prefetch=0,
            grid=grid,
            in_specs=[
                pl.BlockSpec((tb, S), lambda i: (i, 0)),   # state rows (pipelined)
                pl.BlockSpec((tb, A), lambda i: (i, 0)),   # action rows (pipelined)
                pl.BlockSpec((2, S), lambda i: (0, 0)),    # W_s (resident)
                pl.BlockSpec((2, A), lambda i: (0, 0)),    # W_a (resident)
                pl.BlockSpec((2, 1), lambda i: (0, 0)),    # fused bias (resident)
            ],
            out_specs=pl.BlockSpec((2, tb), lambda i: (0, i)),  # lane-dense output
        ),
        compiler_params=pltpu.CompilerParams(
            dimension_semantics=("parallel",),
            vmem_limit_bytes=vmem_limit,
        ),
    )(state, action, w_s, w_a, b)

    # Split the two heads by row; reshape to the module's (B, 1) outputs.
    return q[0][:, None], q[1][:, None]


def init_dual_critic_params(key, state_dim, action_dim):
    """Deterministic init mimicking nn.Linear's default U(-1/sqrt(in), 1/sqrt(in))."""
    in_dim = state_dim + action_dim
    bound = 1.0 / math.sqrt(in_dim)
    k1, k2, k3, k4 = jax.random.split(key, 4)
    # nn.Linear weight layout: (out, in) = (1, in_dim).
    w1 = jax.random.uniform(k1, (1, in_dim), jnp.float32, -bound, bound)
    b1 = jax.random.uniform(k2, (1,), jnp.float32, -bound, bound)
    w2 = jax.random.uniform(k3, (1, in_dim), jnp.float32, -bound, bound)
    b2 = jax.random.uniform(k4, (1,), jnp.float32, -bound, bound)
    return w1, b1, w2, b2


if __name__ == "__main__":
    # B chosen so the auto-tiler produces a 2-step grid (tb=256) with a ragged
    # last block (300 = 256 + 44), exercising the cdiv grid / clipped writes.
    B, STATE_DIM, ACTION_DIM = 300, 3, 2

    key = jax.random.PRNGKey(0)
    k_state, k_action, k_params = jax.random.split(key, 3)

    state = jax.random.normal(k_state, (B, STATE_DIM), jnp.float32)
    action = jax.random.normal(k_action, (B, ACTION_DIM), jnp.float32)
    w1, b1, w2, b2 = init_dual_critic_params(k_params, STATE_DIM, ACTION_DIM)

    # Fuse the two heads ONCE (hoisted out of the per-call path).
    w_s, w_a, b = fuse_dual_critic_params(w1, b1, w2, b2, STATE_DIM)

    q1, q2 = dual_critic_forward(state, action, w_s, w_a, b)
    jax.block_until_ready((q1, q2))

    # Cross-check against a plain JAX reference of the PyTorch math.
    x = jnp.concatenate([state, action], axis=1)
    q1_ref = x @ w1.T + b1
    q2_ref = x @ w2.T + b2
    assert q1.shape == (B, 1) and q2.shape == (B, 1)
    assert jnp.allclose(q1, q1_ref, atol=1e-5)
    assert jnp.allclose(q2, q2_ref, atol=1e-5)

    print("KERNEL_OK")
</pallas_src>

<mosaic_0001>
module attributes {stable_mosaic.version = 11 : i64} {
  func.func @_dual_critic_kernel(%arg0: i32, %arg1: memref<256x3xf32, #tpu.memory_space<vmem>>, %arg2: memref<256x2xf32, #tpu.memory_space<vmem>>, %arg3: memref<2x3xf32, #tpu.memory_space<vmem>>, %arg4: memref<2x2xf32, #tpu.memory_space<vmem>>, %arg5: memref<2x1xf32, #tpu.memory_space<vmem>>, %arg6: memref<2x256xf32, #tpu.memory_space<vmem>>) attributes {dimension_semantics = [#tpu.dimension_semantics<parallel>], iteration_bounds = array<i64: 2>, scalar_prefetch = 0 : i64, scratch_operands = 0 : i64, tpu.core_type = #tpu.core_type<tc>, window_params = [{transform_indices = @transform_0, window_bounds = array<i64: 256, 3>}, {transform_indices = @transform_1, window_bounds = array<i64: 256, 2>}, {pipeline_mode = #tpu.pipeline_mode<synchronous>, transform_indices = @transform_2, window_bounds = array<i64: 2, 3>}, {pipeline_mode = #tpu.pipeline_mode<synchronous>, transform_indices = @transform_3, window_bounds = array<i64: 2, 2>}, {pipeline_mode = #tpu.pipeline_mode<synchronous>, transform_indices = @transform_4, window_bounds = array<i64: 2, 1>}, {transform_indices = @transform_5, window_bounds = array<i64: 2, 256>}]} {
    %c0 = arith.constant 0 : index
    %c0_0 = arith.constant 0 : index
    %0 = vector.load %arg3[%c0, %c0_0] : memref<2x3xf32, #tpu.memory_space<vmem>>, vector<2x3xf32>
    %c0_1 = arith.constant 0 : index
    %c0_2 = arith.constant 0 : index
    %1 = vector.load %arg1[%c0_1, %c0_2] : memref<256x3xf32, #tpu.memory_space<vmem>>, vector<256x3xf32>
    %cst = arith.constant dense<0.000000e+00> : vector<2x256xf32>
    %2 = tpu.matmul %0, %1, %cst {dimension_numbers = #tpu.dot_dimension_numbers<[1], [1], [0], [0], [0, 0, 1, 0], [], []>} : vector<2x3xf32>, vector<256x3xf32>, vector<2x256xf32> -> vector<2x256xf32>
    %c0_3 = arith.constant 0 : index
    %c0_4 = arith.constant 0 : index
    %3 = vector.load %arg4[%c0_3, %c0_4] : memref<2x2xf32, #tpu.memory_space<vmem>>, vector<2x2xf32>
    %c0_5 = arith.constant 0 : index
    %c0_6 = arith.constant 0 : index
    %4 = vector.load %arg2[%c0_5, %c0_6] : memref<256x2xf32, #tpu.memory_space<vmem>>, vector<256x2xf32>
    %cst_7 = arith.constant dense<0.000000e+00> : vector<2x256xf32>
    %5 = tpu.matmul %3, %4, %cst_7 {dimension_numbers = #tpu.dot_dimension_numbers<[1], [1], [0], [0], [0, 0, 1, 0], [], []>} : vector<2x2xf32>, vector<256x2xf32>, vector<2x256xf32> -> vector<2x256xf32>
    %6 = arith.addf %2, %5 : vector<2x256xf32>
    %c0_8 = arith.constant 0 : index
    %c0_9 = arith.constant 0 : index
    %7 = vector.load %arg5[%c0_8, %c0_9] : memref<2x1xf32, #tpu.memory_space<vmem>>, vector<2x1xf32>
    %8 = vector.broadcast %7 : vector<2x1xf32> to vector<2x256xf32>
    %9 = arith.addf %6, %8 : vector<2x256xf32>
    %c0_10 = arith.constant 0 : index
    %c0_11 = arith.constant 0 : index
    %10 = vector.load %arg6[%c0_10, %c0_11] : memref<2x256xf32, #tpu.memory_space<vmem>>, vector<2x256xf32>
    tpu.vector_store %arg6[%c0_10, %c0_11], %9 {strides = array<i32>} : memref<2x256xf32, #tpu.memory_space<vmem>>, vector<2x256xf32>,
    return
  }
  func.func @transform_0(%arg0: i32) -> (i32, i32) {
    %c0_i32 = arith.constant 0 : i32
    %c0_i32_0 = arith.constant 0 : i32
    return %arg0, %c0_i32 : i32, i32
  }
  func.func @transform_1(%arg0: i32) -> (i32, i32) {
    %c0_i32 = arith.constant 0 : i32
    %c0_i32_0 = arith.constant 0 : i32
    return %arg0, %c0_i32 : i32, i32
  }
  func.func @transform_2(%arg0: i32) -> (i32, i32) {
    %c0_i32 = arith.constant 0 : i32
    %c0_i32_0 = arith.constant 0 : i32
    %c0_i32_1 = arith.constant 0 : i32
    return %c0_i32, %c0_i32_0 : i32, i32
  }
  func.func @transform_3(%arg0: i32) -> (i32, i32) {
    %c0_i32 = arith.constant 0 : i32
    %c0_i32_0 = arith.constant 0 : i32
    %c0_i32_1 = arith.constant 0 : i32
    return %c0_i32, %c0_i32_0 : i32, i32
  }
  func.func @transform_4(%arg0: i32) -> (i32, i32) {
    %c0_i32 = arith.constant 0 : i32
    %c0_i32_0 = arith.constant 0 : i32
    %c0_i32_1 = arith.constant 0 : i32
    return %c0_i32, %c0_i32_0 : i32, i32
  }
  func.func @transform_5(%arg0: i32) -> (i32, i32) {
    %c0_i32 = arith.constant 0 : i32
    %c0_i32_0 = arith.constant 0 : i32
    return %c0_i32, %arg0 : i32, i32
  }
}

</mosaic_0001>

<bundles_post_ra>
// kernel: tpu_custom_call.1
= control target key start
LH: loop header
LB: loop body
LE: loop exit
PB: predicated region body
PF: predicated region fallthrough
CT: control target
= control target key end

     0   :  { %10 = vsyncpa [#allocation3], 0  ;;  %s1356_s0 = inlined_call_operand.vmem [shape: f32[300,3], index: 0, kind: input, shape index: {}]   ;;  %s1357_s1 = inlined_call_operand.vmem [shape: f32[300,2], index: 1, kind: input, shape index: {}]   ;;  %s1358_s2 = inlined_call_operand.vmem [shape: f32[2,3], index: 2, kind: input, shape index: {}]   ;;  %s1359_s3 = inlined_call_operand.vmem [shape: f32[2,2], index: 3, kind: input, shape index: {}]   ;;  %s1360_s4 = inlined_call_operand.vmem [shape: f32[2,1], index: 4, kind: input, shape index: {}]   ;;  %s1361_s5 = inlined_call_operand.hbm [shape: f32[2,300], index: 5, kind: output, shape index: {}]  }
   0x1   :  { %12 = vsyncpa [#allocation3 + $0x1], 0  ;;  %s1100_s18 = smov 0   ;;  %s1102_s19 = smov 0  }
   0x2   :  { %s1104_s20 = smov 0   ;;  %s1106_s21 = smov 0  }
   0x3 LB: > { %s1121_s22 = sadd.s32 4294967295, %s1066_s21   ;;  %s812_s23 = sadd.s32 4294967294, %s1066_s21   ;;  %s1066_s21 = sphi %s1106_s21, %s1367_s21   ;;  %s1062_s20 = sphi %s1104_s20, %s1366_s20   ;;  %s1058_s19 = sphi %s1102_s19, %s1365_s19   ;;  %s1054_s18 = sphi %s1100_s18, %s1364_s18  }
   0x4   : > { %s1125_s24 = sadd.s32 1, %s1066_s21   ;;  %s140_s25 = sadd.s32 1, %s1062_s20 }
   0x5   : > { %s137_s26 = ssub.s32 %s1066_s21, %s1125_s24  ;;  %p150_p0 = scmp.ne.s32.totalorder %s1062_s20, %s1058_s19 }
   0x6   : > { %p138_p1 = scmp.eq.s32.totalorder %s137_s26, 0  ;;  %p151_p2 = scmp.eq.s32.totalorder %s1121_s22, 1 }
   0x7   : > { %p156_p3 = scmp.ne.s32.totalorder %s1058_s19, %s1054_s18  ;;  %p157_p4 = scmp.eq.s32.totalorder %s812_s23, 1 }
   0x8   : > { %s1136_s27 = scalar_select %p138_p1, %s1062_s20, %s140_s25  }
   0x9   : > { %p1138_p5 = por %p151_p2, %p150_p0  ;;  %p1142_p6 = por %p157_p4, %p156_p3 }
   0xa   : > { %p815_p7 = scmp.ge.s32.totalorder %s1066_s21, 1  ;;  %p218_p8 = scmp.lt.s32.totalorder %s1066_s21, 3 }
   0xc   : > { %p219_p9 = pnand %p815_p7, %p218_p8 }
   0xd   : > { %s817_s30 = sshll.u32 (!%p219_p9), %s1121_s22, 5  ;;  %s256_s25 = sand.u32 (!%p219_p9), 1, %s1058_s19  }
   0xe   : > { %222 = sbr.rel (%p219_p9) target bundleno = 317 (0x13d), region = 40  ;;  %p264_p10 = scmp.lt.s32.totalorder (!%p219_p9), %s817_s30, 37 }
   0xf   : > { %s816_s26 = sshll.u32 (!%p219_p9), %s256_s25, 2  ;;  %s1309_s6 = scalar_lea.sflag (!%p219_p9), [#allocation3], %s256_s25 }
  0x13   : > { %vm358_vm0 = vcmask 15360   ;;  %v1152_v0 = vld [vmem:[%s1359_s3] sm:$0x3]  ;;  %vm529_vm1 = vcmask 23552   ;;  %v1068_v2 = vmov 0   ;;  %s1369_s30 = smov (!%p264_p10, %s817_s30), 37 }
  0x14   : > { %930 = vmatprep.mubr.msk.f32.mxu0 %vm358_vm0, %v1152_v0  ;;  %v1159_v1 = vld [vmem:[%s1358_s2] sm:$0x3]  ;;  %1005 = vset.pattern.permute.xlu0 %v1068_v2  ;;  %s818_s12 = sshll.u32 %s1369_s30, 3  ;;  %s258_s30 = scalar_lea.vmem [#allocation2], %s816_s26 }
  0x15   : > { %v700_v3 = vld [vmem:[%s1360_s4] sm:$0x3]  ;;  %964 = vmatprep.mubr.msk.f32.mxu1 %vm529_vm1, %v1159_v1  ;;  %s1169_s15 = scalar_lea.vmem %s1357_s1, %s818_s12  ;;  %s1174_s23 = scalar_lea.vmem %s1356_s0, %s818_s12 }
  0x16   : > { %703 = vperm.xlu0 %1005, %v700_v3   ;;  %v357_v4 = vld [vmem:[%s1169_s15 + $0xf8] sm:$0xff]  ;;  %v356_v8 = vld [vmem:[%s1169_s15 + $0xf0] sm:$0xff]  ;;  %v355_v12 = vld [vmem:[%s1169_s15 + $0xe8] sm:$0xff]  ;;  %s889_s7 = sshll.u32 (%p1138_p5), %s1121_s22, 1 }
  0x17   : > { %v324_v5 = vld [vmem:[%s1174_s23 + $0xf8] sm:$0xff]  ;;  %898 = vmatprep.subr.msk.mxu0 %vm358_vm0, %v357_v4  ;;  %v323_v9 = vld [vmem:[%s1174_s23 + $0xf0] sm:$0xff]  ;;  %v322_v13 = vld [vmem:[%s1174_s23 + $0xe8] sm:$0xff]  ;;  %s729_s8 = ssub.s32 (%p1138_p5), 3, %s889_s7 }
  0x18   : > { %v341_v6 = vld [vmem:[%s1169_s15 + $0x78] sm:$0xff]  ;;  %932 = vmatprep.subr.msk.mxu1 %vm529_vm1, %v324_v5  ;;  %v340_v10 = vld [vmem:[%s1169_s15 + $0x70] sm:$0xff]  ;;  %v339_v14 = vld [vmem:[%s1169_s15 + $0x68] sm:$0xff]  ;;  %p730_p11 = scmp.lt.s32.totalorder (%p1138_p5), %s729_s8, 2 }
  0x19   : > { %v308_v7 = vld [vmem:[%s1174_s23 + $0x78] sm:$0xff]  ;;  %899 = vmatpush3.xpose.msk.msra.mxu0 %vm358_vm0, %v341_v6  ;;  %v307_v11 = vld [vmem:[%s1174_s23 + $0x70] sm:$0xff]  ;;  %v306_v15 = vld [vmem:[%s1174_s23 + $0x68] sm:$0xff] }
  0x1a   : > { %933 = vmatpush3.xpose.msk.msra.mxu1 %vm529_vm1, %v308_v7  ;;  %900 = vmatprep.subr.msk.mxu0 %vm358_vm0, %v356_v8  ;;  %v354_v16 = vld [vmem:[%s1169_s15 + $0xe0] sm:$0xff]  ;;  %v353_v20 = vld [vmem:[%s1169_s15 + $0xd8] sm:$0xff]  ;;  %v352_v24 = vld [vmem:[%s1169_s15 + $0xd0] sm:$0xff] }
  0x1b   : > { %934 = vmatprep.subr.msk.mxu1 %vm529_vm1, %v323_v9  ;;  %v321_v17 = vld [vmem:[%s1174_s23 + $0xe0] sm:$0xff]  ;;  %v320_v21 = vld [vmem:[%s1174_s23 + $0xd8] sm:$0xff]  ;;  %v319_v25 = vld [vmem:[%s1174_s23 + $0xd0] sm:$0xff] }
  0x1c   : > { %v338_v18 = vld [vmem:[%s1169_s15 + $0x60] sm:$0xff]  ;;  %v337_v22 = vld [vmem:[%s1169_s15 + $0x58] sm:$0xff]  ;;  %v336_v26 = vld [vmem:[%s1169_s15 + $0x50] sm:$0xff] }
  0x1d   : > { %901 = vmatpush3.xpose.msk.msra.mxu0 %vm358_vm0, %v340_v10  ;;  %v305_v19 = vld [vmem:[%s1174_s23 + $0x60] sm:$0xff]  ;;  %v304_v23 = vld [vmem:[%s1174_s23 + $0x58] sm:$0xff]  ;;  %v303_v27 = vld [vmem:[%s1174_s23 + $0x50] sm:$0xff] }
  0x1e   : > { %935 = vmatpush3.xpose.msk.msra.mxu1 %vm529_vm1, %v307_v11  ;;  %902 = vmatprep.subr.msk.mxu0 %vm358_vm0, %v355_v12  ;;  %v351_v28 = vld [vmem:[%s1169_s15 + $0xc8] sm:$0xff]  ;;  %v350_v32 = vld [vmem:[%s1169_s15 + $0xc0] sm:$0xff]  ;;  %v349_v36 = vld [vmem:[%s1169_s15 + $0xb8] sm:$0xff] }
  0x1f   : > { %936 = vmatprep.subr.msk.mxu1 %vm529_vm1, %v322_v13  ;;  %v318_v29 = vld [vmem:[%s1174_s23 + $0xc8] sm:$0xff]  ;;  %v317_v33 = vld [vmem:[%s1174_s23 + $0xc0] sm:$0xff]  ;;  %v316_v37 = vld [vmem:[%s1174_s23 + $0xb8] sm:$0xff] }
  0x20   : > { %v335_v30 = vld [vmem:[%s1169_s15 + $0x48] sm:$0xff]  ;;  %v334_v34 = vld [vmem:[%s1169_s15 + $0x40] sm:$0xff]  ;;  %v333_v38 = vld [vmem:[%s1169_s15 + $0x38] sm:$0xff] }
  0x21   : > { %903 = vmatpush3.xpose.msk.msra.mxu0 %vm358_vm0, %v339_v14  ;;  %v302_v31 = vld [vmem:[%s1174_s23 + $0x48] sm:$0xff]  ;;  %v301_v35 = vld [vmem:[%s1174_s23 + $0x40] sm:$0xff]  ;;  %v300_v39 = vld [vmem:[%s1174_s23 + $0x38] sm:$0xff] }
  0x22   : > { %937 = vmatpush3.xpose.msk.msra.mxu1 %vm529_vm1, %v306_v15  ;;  %904 = vmatprep.subr.msk.mxu0 %vm358_vm0, %v354_v16  ;;  %v348_v40 = vld [vmem:[%s1169_s15 + $0xb0] sm:$0xff]  ;;  %v347_v44 = vld [vmem:[%s1169_s15 + $0xa8] sm:$0xff]  ;;  %v346_v48 = vld [vmem:[%s1169_s15 + $0xa0] sm:$0xff] }
  0x23   : > { %938 = vmatprep.subr.msk.mxu1 %vm529_vm1, %v321_v17  ;;  %v315_v41 = vld [vmem:[%s1174_s23 + $0xb0] sm:$0xff]  ;;  %v314_v45 = vld [vmem:[%s1174_s23 + $0xa8] sm:$0xff]  ;;  %v313_v49 = vld [vmem:[%s1174_s23 + $0xa0] sm:$0xff] }
  0x24   : > { %v332_v42 = vld [vmem:[%s1169_s15 + $0x30] sm:$0xff]  ;;  %v331_v46 = vld [vmem:[%s1169_s15 + $0x28] sm:$0xff]  ;;  %v330_v50 = vld [vmem:[%s1169_s15 + $0x20] sm:$0xff] }
  0x25   : > { %905 = vmatpush3.xpose.msk.msra.mxu0 %vm358_vm0, %v338_v18  ;;  %v299_v43 = vld [vmem:[%s1174_s23 + $0x30] sm:$0xff]  ;;  %v298_v47 = vld [vmem:[%s1174_s23 + $0x28] sm:$0xff]  ;;  %v297_v51 = vld [vmem:[%s1174_s23 + $0x20] sm:$0xff] }
  0x26   : > { %939 = vmatpush3.xpose.msk.msra.mxu1 %vm529_vm1, %v305_v19  ;;  %906 = vmatprep.subr.msk.mxu0 %vm358_vm0, %v353_v20  ;;  %v345_v52 = vld [vmem:[%s1169_s15 + $0x98] sm:$0xff]  ;;  %v344_v56 = vld [vmem:[%s1169_s15 + $0x90] sm:$0xff]  ;;  %v343_v60 = vld [vmem:[%s1169_s15 + $0x88] sm:$0xff] }
  0x27   : > { %940 = vmatprep.subr.msk.mxu1 %vm529_vm1, %v320_v21  ;;  %v312_v53 = vld [vmem:[%s1174_s23 + $0x98] sm:$0xff]  ;;  %v311_v57 = vld [vmem:[%s1174_s23 + $0x90] sm:$0xff]  ;;  %v310_v61 = vld [vmem:[%s1174_s23 + $0x88] sm:$0xff] }
  0x28   : > { %v329_v54 = vld [vmem:[%s1169_s15 + $0x18] sm:$0xff]  ;;  %v328_v58 = vld [vmem:[%s1169_s15 + $0x10] sm:$0xff]  ;;  %v327_v62 = vld [vmem:[%s1169_s15 + $0x8] sm:$0xff] }
  0x29   : > { %907 = vmatpush3.xpose.msk.msra.mxu0 %vm358_vm0, %v337_v22  ;;  %v296_v55 = vld [vmem:[%s1174_s23 + $0x18] sm:$0xff]  ;;  %v295_v59 = vld [vmem:[%s1174_s23 + $0x10] sm:$0xff]  ;;  %v294_v63 = vld [vmem:[%s1174_s23 + $0x8] sm:$0xff] }
  0x2a   : > { %941 = vmatpush3.xpose.msk.msra.mxu1 %vm529_vm1, %v304_v23  ;;  %908 = vmatprep.subr.msk.mxu0 %vm358_vm0, %v352_v24  ;;  %v342_v2 = vld [vmem:[%s1169_s15 + $0x80] sm:$0xff] }
  0x2b   : > { %942 = vmatprep.subr.msk.mxu1 %vm529_vm1, %v319_v25  ;;  %v309_v3 = vld [vmem:[%s1174_s23 + $0x80] sm:$0xff] }
  0x2c   : > { %v326_v4 = vld [vmem:[%s1169_s15] sm:$0xff] }
  0x2d   : > { %909 = vmatpush3.xpose.msk.msra.mxu0 %vm358_vm0, %v336_v26  ;;  %v293_v5 = vld [vmem:[%s1174_s23] sm:$0xff] }
  0x2e   : > { %943 = vmatpush3.xpose.msk.msra.mxu1 %vm529_vm1, %v303_v27  ;;  %910 = vmatprep.subr.msk.mxu0 %vm358_vm0, %v351_v28 }
  0x2f   : > { %944 = vmatprep.subr.msk.mxu1 %vm529_vm1, %v318_v29 }
  0x31   : > { %911 = vmatpush3.xpose.msk.msra.mxu0 %vm358_vm0, %v335_v30 }
  0x32   : > { %945 = vmatpush3.xpose.msk.msra.mxu1 %vm529_vm1, %v302_v31  ;;  %912 = vmatprep.subr.msk.mxu0 %vm358_vm0, %v350_v32 }
  0x33   : > { %946 = vmatprep.subr.msk.mxu1 %vm529_vm1, %v317_v33 }
  0x35   : > { %913 = vmatpush3.xpose.msk.msra.mxu0 %vm358_vm0, %v334_v34 }
  0x36   : > { %947 = vmatpush3.xpose.msk.msra.mxu1 %vm529_vm1, %v301_v35  ;;  %914 = vmatprep.subr.msk.mxu0 %vm358_vm0, %v349_v36 }
  0x37   : > { %948 = vmatprep.subr.msk.mxu1 %vm529_vm1, %v316_v37 }
  0x39   : > { %915 = vmatpush3.xpose.msk.msra.mxu0 %vm358_vm0, %v333_v38 }
  0x3a   : > { %949 = vmatpush3.xpose.msk.msra.mxu1 %vm529_vm1, %v300_v39  ;;  %916 = vmatprep.subr.msk.mxu0 %vm358_vm0, %v348_v40 }
  0x3b   : > { %950 = vmatprep.subr.msk.mxu1 %vm529_vm1, %v315_v41 }
  0x3d   : > { %917 = vmatpush3.xpose.msk.msra.mxu0 %vm358_vm0, %v332_v42 }
  0x3e   : > { %951 = vmatpush3.xpose.msk.msra.mxu1 %vm529_vm1, %v299_v43  ;;  %918 = vmatprep.subr.msk.mxu0 %vm358_vm0, %v347_v44 }
  0x3f   : > { %952 = vmatprep.subr.msk.mxu1 %vm529_vm1, %v314_v45 }
  0x41   : > { %919 = vmatpush3.xpose.msk.msra.mxu0 %vm358_vm0, %v331_v46 }
  0x42   : > { %953 = vmatpush3.xpose.msk.msra.mxu1 %vm529_vm1, %v298_v47  ;;  %920 = vmatprep.subr.msk.mxu0 %vm358_vm0, %v346_v48 }
  0x43   : > { %954 = vmatprep.subr.msk.mxu1 %vm529_vm1, %v313_v49 }
  0x45   : > { %921 = vmatpush3.xpose.msk.msra.mxu0 %vm358_vm0, %v330_v50 }
  0x46   : > { %955 = vmatpush3.xpose.msk.msra.mxu1 %vm529_vm1, %v297_v51  ;;  %922 = vmatprep.subr.msk.mxu0 %vm358_vm0, %v345_v52 }
  0x47   : > { %956 = vmatprep.subr.msk.mxu1 %vm529_vm1, %v312_v53 }
  0x49   : > { %923 = vmatpush3.xpose.msk.msra.mxu0 %vm358_vm0, %v329_v54 }
  0x4a   : > { %957 = vmatpush3.xpose.msk.msra.mxu1 %vm529_vm1, %v296_v55  ;;  %924 = vmatprep.subr.msk.mxu0 %vm358_vm0, %v344_v56 }
  0x4b   : > { %958 = vmatprep.subr.msk.mxu1 %vm529_vm1, %v311_v57 }
  0x4d   : > { %925 = vmatpush3.xpose.msk.msra.mxu0 %vm358_vm0, %v328_v58 }
  0x4e   : > { %959 = vmatpush3.xpose.msk.msra.mxu1 %vm529_vm1, %v295_v59  ;;  %926 = vmatprep.subr.msk.mxu0 %vm358_vm0, %v343_v60 }
  0x4f   : > { %960 = vmatprep.subr.msk.mxu1 %vm529_vm1, %v310_v61 }
  0x51   : > { %927 = vmatpush3.xpose.msk.msra.mxu0 %vm358_vm0, %v327_v62 }
  0x52   : > { %961 = vmatpush3.xpose.msk.msra.mxu1 %vm529_vm1, %v294_v63  ;;  %928 = vmatprep.subr.msk.mxu0 %vm358_vm0, %v342_v2 }
  0x53   : > { %962 = vmatprep.subr.msk.mxu1 %vm529_vm1, %v309_v3 }
  0x55   : > { %929 = vmatpush3.xpose.msk.msra.mxu0 %vm358_vm0, %v326_v4 }
  0x56   : > { %963 = vmatpush3.xpose.msk.msra.mxu1 %vm529_vm1, %v293_v5 }
  0x58   : > { %931 = vmatmul.mubr.msk.f32.vlgmr.msra.gmra.mxu0 %vm358_vm0, %v1152_v0 }
  0x59   : > { %965 = vmatmul.mubr.msk.f32.vlgmr.msra.gmra.mxu1 %vm529_vm1, %v1159_v1 }
  0x91   : > { %v704_v9 = vpop.permute.xlu0 %703 }
 0x118   : > { %v524_v6 = vpop.f32.mrf.mxu0 }
 0x119   : > { %v695_v7 = vpop.f32.mrf.mxu1 }
 0x11a   : > { %v696_v8 = vadd.f32 %v695_v7, %v524_v6  ;;  %v526_v10 = vpop.f32.mrf.mxu0 }
 0x11b   : > { %v697_v11 = vpop.f32.mrf.mxu1 }
 0x11c   : > { %v698_v12 = vadd.f32 %v697_v11, %v526_v10  ;;  %v706_v13 = vadd.f32 %v704_v9, %v696_v8 }
 0x11e   : > { %v707_v14 = vadd.f32 %v704_v9, %v698_v12  ;;  %727 = sbr.rel (!%p1138_p5) target bundleno = 317 (0x13d), region = 44 }
 0x120   : > { %v710_v15 = vcombine.low %v706_v13, %v707_v14 }
 0x122   : > { %887 = vst.sshfl [vmem:[%s258_s30] sm:$0x33 pattern:$0x76325410] %v710_v15 }
 0x123   : > { %s1371_s8 = smov (!%p730_p11, %s729_s8), 2 }
 0x124   : > { %s1314_s9 = sshll.u32 %s1371_s8, 5 }
 0x125   : > { %s734_s10 = ssub.s32 64, %s1314_s9 }
 0x126   : > { %735 = vsyncadd %s1309_s6, %s734_s10  ;;  %p891_p12 = scmp.ne.s32.totalorder %s1314_s9, 0  ;;  %s897_s11 = sshll.u32 %s1121_s22, 6 }
 0x127   : > { %s738_s13 = scalar_lea.hbm %s1361_s5, %s897_s11  ;;  %s741_s14 = sshll.u32 %s258_s30, 4  ;;  %s742_s14 = int_to_ptr.vmem [resolvable:$true] %s741_s14 }
 0x128   : > { %s1006_s15 = scalar_lea.vmem %s742_s14, %s1314_s9  ;;  %s1069_s16 = smov [#allocation2]  }
 0x129   : > { %p1007_p13 = scmp.ne.s32.totalorder %s742_s14, %s1006_s15  ;;  %s1010_s17 = sshll.u32 %s1069_s16, 4  ;;  %s1011_s17 = int_to_ptr.vmem [resolvable:$false] %s1010_s17 }
 0x12a   : > { %s1012_s23 = scalar_lea.vmem %s1011_s17, 128  ;;  %p1013_p2 = scmp.lt.s32.totalorder %s742_s14, %s1011_s17 }
 0x12b   : > { %p1008_p0 = pnand %p1007_p13, %p891_p12  ;;  %p1014_p3 = scmp.lt.s32.totalorder %s1012_s23, %s1006_s15 }
 0x12d   : > { %p1009_p1 = pneg %p1008_p0  ;;  %p1015_p4 = por %p1014_p3, %p1013_p2 }
 0x12f   : > { %p1016_p5 = pnand %p1015_p4, %p1009_p1 }
 0x131   : > { %1019 = shalt.err (!%p1016_p5)
}
 0x132   : > { %s1020_s22 = scalar_lea.hbm %s738_s13, %s1314_s9  ;;  %s1024_s30 = scalar_lea.hbm %s1361_s5, 96 }
 0x133   : > { %p1021_p7 = scmp.ne.s32.totalorder %s738_s13, %s1020_s22  ;;  %p1025_p10 = scmp.lt.s32.totalorder %s738_s13, %s1361_s5 }
 0x134   : > { %p1026_p11 = scmp.lt.s32.totalorder %s1024_s30, %s1020_s22 }
 0x135   : > { %p1022_p8 = pnand %p1021_p7, %p891_p12 }
 0x136   : > { %p1027_p13 = por %p1026_p11, %p1025_p10 }
 0x137   : > { %p1023_p9 = pneg %p1022_p8 }
 0x139   : > { %p1028_p0 = pnand %p1027_p13, %p1023_p9 }
 0x13b   : > { %1031 = shalt.err (!%p1028_p0)
}
 0x13c   : > { %744 = dma.vmem_to_hbm [thread:$0]  (%p891_p12), %s742_s14, %s1314_s9, %s738_s13, %s1309_s6  }
 0x13d PF: > { %p971_p1 = scmp.ge.s32.totalorder %s1066_s21, 2  ;;  %s753_s10 = sand.u32 1, %s1054_s18  }
 0x13e   : > { %s754_s11 = scalar_lea.sflag [#allocation3], %s753_s10 }
 0x13f   : > { %p968_p2 = pnand %p971_p1, %p1142_p6 }
 0x141   : > { %p969_p3 = pneg %p968_p2 }
 0x143   : > { %1049 = dma.done.wait (%p969_p3), %s754_s11, 64  }
 0x144   : > { %1051 = vsyncadd (%p969_p3), %s754_s11, 4294967232  ;;  %p15_p4 = scmp.ge.s32.totalorder %s1125_s24, 4   ;;  %s1364_s18 = smov %s1058_s19 }
 0x145   : > { %s1365_s19 = smov %s1062_s20  ;;  %s1366_s20 = smov %s1136_s27 }
 0x146   : > { %s1367_s21 = smov %s1125_s24  ;;  %17 = sbr.rel (!%p15_p4) target bundleno = 3 (0x3), region = 78 }
 0x14b   :  { %759 = vsyncpa [#allocation3], 1 }
 0x14c   :  { %761 = vsyncpa [#allocation3 + $0x1], 1 }

</bundles_post_ra>
